<compile_context>
chip_gen: v7x
topology: tpu7x:2x2x1
jax: 0.10.0
libtpu: 0.0.40
codegen_flags: <defaults>
</compile_context>

<pallas_src>
import math

import jax
import jax.numpy as jnp
from jax.experimental import pallas as pl
from jax.experimental.pallas import tpu as pltpu


def cls_token_kernel(x_ref, w_ref, o_ref):
    """x_ref: (Bb, S*D), w_ref: (1, D), o_ref: (Bb, (S+1)*D)."""
    sd = x_ref.shape[1]
    # Bulk, lane-dense copy of the sequence tokens (lane offset 0, width S*D).
    o_ref[:, :sd] = x_ref[...]
    # Append the CLS token at the end of every row (in-kernel broadcast of the
    # VMEM-resident (1, D) weight; cheap VPU work, hidden under the HBM DMA).
    o_ref[:, sd:] = jnp.broadcast_to(w_ref[...], (o_ref.shape[0], w_ref.shape[1]))


def _sublane_align(dtype) -> int:
    """Sublane packing granularity for the dtype (f32: 8, bf16: 16, int8/fp8: 32)."""
    itemsize = jnp.dtype(dtype).itemsize
    return {4: 8, 2: 16, 1: 32}.get(itemsize, 8)


def cls_token_forward(
    x: jax.Array,
    weight: jax.Array,
    *,
    block_b: int | None = None,
    min_bytes_for_pallas: int = 1 << 20,
) -> jax.Array:
    """x: (B, S, D); weight: (D,). Returns (B, S+1, D) == cat([x, cls], dim=1)."""
    B, S, D = x.shape
    dtype = x.dtype
    SD = S * D
    OD = (S + 1) * D
    itemsize = jnp.dtype(dtype).itemsize

    # Minor: weight is cast to x's dtype (matches mixed-precision behaviour of
    # the PyTorch module when autocast downcasts activations).
    w = weight.astype(dtype)

    # Fast path: for tiny tensors the fixed pallas_call launch/grid overhead
    # dominates a zero-FLOP concat; let XLA's native concatenate handle it.
    if block_b is None and (B * (SD + OD) * itemsize) < min_bytes_for_pallas:
        return jnp.concatenate(
            [x, jnp.broadcast_to(w[None, None, :], (B, 1, D))], axis=1
        )

    align = _sublane_align(dtype)

    if block_b is None:
        # Target ~4 MiB output blocks. Budget uses the lane-padded width
        # (OD rounded up to a multiple of 128) so the real VMEM footprint —
        # double-buffered in + out — stays well under the 32 MiB scoped limit
        # on every generation (v7x included, where physical VMEM is 64 MiB).
        target_bytes = 4 * 1024 * 1024
        od_padded = pl.cdiv(OD, 128) * 128
        bb = max(align, ((target_bytes // max(od_padded * itemsize, 1)) // align) * align)
        block_b = int(min(B, bb))
        # v7x megacore / pipelining: guarantee >= 2 grid steps when the batch
        # is large enough to split on sublane-aligned boundaries.
        if block_b >= B and B >= 2 * align:
            half = ((pl.cdiv(B, 2) + align - 1) // align) * align
            if half < B:
                block_b = int(half)

    x2 = x.reshape(B, SD)      # free reshape: contiguous flatten of (S, D)
    w2 = w.reshape(1, D)       # passed as-is; broadcast happens in-kernel

    grid = (pl.cdiv(B, block_b),)

    out2 = pl.pallas_call(
        cls_token_kernel,
        out_shape=jax.ShapeDtypeStruct((B, OD), dtype),
        grid=grid,
        in_specs=[
            pl.BlockSpec((block_b, SD), lambda b: (b, 0)),
            pl.BlockSpec((1, D), lambda b: (0, 0)),   # constant -> VMEM resident
        ],
        out_specs=pl.BlockSpec((block_b, OD), lambda b: (b, 0)),
        compiler_params=pltpu.CompilerParams(
            dimension_semantics=("parallel",),
            vmem_limit_bytes=32 * 1024 * 1024,
        ),
        cost_estimate=pl.CostEstimate(
            flops=0,
            transcendentals=0,
            bytes_accessed=int(B * (SD + OD) * itemsize + D * itemsize),
        ),
    )(x2, w2)

    return out2.reshape(B, S + 1, D)


if __name__ == "__main__":
    # Module config: d_token=32, initialization='uniform'
    d_token = 32
    B, S = 2, 8

    key = jax.random.PRNGKey(0)
    kx, kw, kx2 = jax.random.split(key, 3)

    # Deterministic parameter init matching _TokenInitialization.UNIFORM:
    # Uniform(-1/sqrt(d), 1/sqrt(d))
    s = 1.0 / math.sqrt(d_token)
    weight = jax.random.uniform(kw, (d_token,), minval=-s, maxval=s,
                                dtype=jnp.float32)

    # --- tiny, module-spec-sized input: force the Pallas path (threshold 0) ---
    x = jax.random.normal(kx, (B, S, d_token), dtype=jnp.float32)
    out = cls_token_forward(x, weight, min_bytes_for_pallas=0)
    out = jax.block_until_ready(out)

    ref = jnp.concatenate(
        [x, jnp.broadcast_to(weight[None, None, :], (B, 1, d_token))], axis=1
    )
    assert out.shape == (B, S + 1, d_token), out.shape
    assert jnp.allclose(out, ref), "mismatch vs reference (small)"

    # --- slightly larger batch: exercises multi-step grid / ragged last block ---
    B2 = 20
    x2 = jax.random.normal(kx2, (B2, S, d_token), dtype=jnp.float32)
    out2 = cls_token_forward(x2, weight, block_b=8, min_bytes_for_pallas=0)
    out2 = jax.block_until_ready(out2)
    ref2 = jnp.concatenate(
        [x2, jnp.broadcast_to(weight[None, None, :], (B2, 1, d_token))], axis=1
    )
    assert out2.shape == (B2, S + 1, d_token), out2.shape
    assert jnp.allclose(out2, ref2), "mismatch vs reference (tiled)"

    print("KERNEL_OK")
</pallas_src>

<mosaic_0001>
module attributes {stable_mosaic.version = 11 : i64} {
  func.func @cls_token_kernel(%arg0: i32, %arg1: memref<2x256xf32, #tpu.memory_space<vmem>>, %arg2: memref<1x32xf32, #tpu.memory_space<vmem>>, %arg3: memref<2x288xf32, #tpu.memory_space<vmem>>) attributes {dimension_semantics = [#tpu.dimension_semantics<parallel>], iteration_bounds = array<i64: 1>, scalar_prefetch = 0 : i64, scratch_operands = 0 : i64, tpu.core_type = #tpu.core_type<tc>, window_params = [{transform_indices = @transform_0, window_bounds = array<i64: 2, 256>}, {pipeline_mode = #tpu.pipeline_mode<synchronous>, transform_indices = @transform_1, window_bounds = array<i64: 1, 32>}, {transform_indices = @transform_2, window_bounds = array<i64: 2, 288>}]} {
    %c0 = arith.constant 0 : index
    %c0_0 = arith.constant 0 : index
    %0 = vector.load %arg1[%c0, %c0_0] : memref<2x256xf32, #tpu.memory_space<vmem>>, vector<2x256xf32>
    %c0_1 = arith.constant 0 : index
    %c0_2 = arith.constant 0 : index
    %1 = vector.load %arg3[%c0_1, %c0_2] : memref<2x288xf32, #tpu.memory_space<vmem>>, vector<2x256xf32>
    tpu.vector_store %arg3[%c0_1, %c0_2], %0 {strides = array<i32>} : memref<2x288xf32, #tpu.memory_space<vmem>>, vector<2x256xf32>,
    %c0_3 = arith.constant 0 : index
    %c0_4 = arith.constant 0 : index
    %2 = vector.load %arg2[%c0_3, %c0_4] : memref<1x32xf32, #tpu.memory_space<vmem>>, vector<1x32xf32>
    %3 = vector.shape_cast %2 : vector<1x32xf32> to vector<1x32xf32>
    %4 = vector.broadcast %3 : vector<1x32xf32> to vector<2x32xf32>
    %c0_5 = arith.constant 0 : index
    %c256 = arith.constant 256 : index
    %5 = vector.load %arg3[%c0_5, %c256] : memref<2x288xf32, #tpu.memory_space<vmem>>, vector<2x32xf32>
    tpu.vector_store %arg3[%c0_5, %c256], %4 {strides = array<i32>} : memref<2x288xf32, #tpu.memory_space<vmem>>, vector<2x32xf32>,
    return
  }
  func.func @transform_0(%arg0: i32) -> (i32, i32) {
    %c0_i32 = arith.constant 0 : i32
    %c0_i32_0 = arith.constant 0 : i32
    return %arg0, %c0_i32 : i32, i32
  }
  func.func @transform_1(%arg0: i32) -> (i32, i32) {
    %c0_i32 = arith.constant 0 : i32
    %c0_i32_0 = arith.constant 0 : i32
    %c0_i32_1 = arith.constant 0 : i32
    return %c0_i32, %c0_i32_0 : i32, i32
  }
  func.func @transform_2(%arg0: i32) -> (i32, i32) {
    %c0_i32 = arith.constant 0 : i32
    %c0_i32_0 = arith.constant 0 : i32
    return %arg0, %c0_i32 : i32, i32
  }
}

</mosaic_0001>

<bundles_post_ra>
// kernel: tpu_custom_call.1
= control target key start
LH: loop header
LB: loop body
LE: loop exit
PB: predicated region body
PF: predicated region fallthrough
CT: control target
= control target key end

     0   :  { %7 = vsyncpa [#allocation3], 0  ;;  %s145_s0 = inlined_call_operand.hbm [shape: f32[2,256], index: 0, kind: input, shape index: {}]   ;;  %s146_s1 = inlined_call_operand.vmem [shape: f32[1,32], index: 1, kind: input, shape index: {}]   ;;  %s147_s2 = inlined_call_operand.hbm [shape: f32[2,288], index: 2, kind: output, shape index: {}]  }
   0x1   :  { %8 = vsyncpa [#allocation4], 0  ;;  %s101_s9 = smov [#allocation2]   ;;  %s53_s13 = scalar_lea.hbm %s145_s0, 64 }
   0x2   :  { %s15_s10 = sshll.u32 %s101_s9, 4  ;;  %p54_p0 = scmp.ne.s32.totalorder %s145_s0, %s53_s13  ;;  %s16_s10 = int_to_ptr.vmem [resolvable:$true] %s15_s10 }
   0x3   :  { %p57_p1 = scmp.lt.u32.totalorder %s53_s13, %s145_s0 }
   0x5   :  { %p59_p2 = pnand %p57_p1, %p54_p0 }
   0x7   :  { %62 = shalt.err (!%p59_p2)
}
   0x8   :  { %s63_s18 = scalar_lea.vmem %s16_s10, 64  ;;  %p68_p4 = scmp.lt.s32.totalorder %s16_s10, %s16_s10 }
   0x9   :  { %p64_p3 = scmp.ne.s32.totalorder %s16_s10, %s63_s18  ;;  %p69_p5 = scmp.lt.s32.totalorder %s63_s18, %s63_s18 }
   0xb   :  { %p70_p6 = por %p69_p5, %p68_p4 }
   0xd   :  { %p71_p7 = pnand %p70_p6, %p64_p3 }
   0xf   :  { %74 = shalt.err (!%p71_p7)
}
  0x10   :  { %18 = dma.hbm_to_vmem [thread:$0]  %s145_s0, 64, %s16_s10, [#allocation3]  }
  0x11   :  { %97 = dma.done.wait [#allocation3], 64  }
  0x12   :  { %98 = vsyncadd [#allocation3], 4294967232  ;;  %s102_s21 = smov [#allocation5]   ;;  %vm33_vm0 = vcmask 254976   ;;  %v24_v0 = vld [vmem:[#allocation2] sm:$0xf] }
  0x13   :  { %s41_s22 = sshll.u32 %s102_s21, 4  ;;  %v50_v1 = vld [vmem:[%s146_s1] ss:$0 sm:$0xff]  ;;  %25 = vst [vmem:[#allocation5] sm:$0xf] %v24_v0  ;;  %s42_s22 = int_to_ptr.vmem [resolvable:$true] %s41_s22 }
  0x14   :  { %34 = vst.msk [vmem:[#allocation5 + $0x4] sm:$0x3] %vm33_vm0, %v50_v1  ;;  %s75_s25 = scalar_lea.vmem %s42_s22, 96  ;;  %p80_p9 = scmp.lt.s32.totalorder %s42_s22, %s42_s22 }
  0x15   :  { %p76_p8 = scmp.ne.s32.totalorder %s42_s22, %s75_s25  ;;  %p81_p10 = scmp.lt.s32.totalorder %s75_s25, %s75_s25 }
  0x17   :  { %p82_p11 = por %p81_p10, %p80_p9 }
  0x19   :  { %p83_p12 = pnand %p82_p11, %p76_p8 }
  0x1b   :  { %86 = shalt.err (!%p83_p12)
}
  0x1c   :  { %s87_s27 = scalar_lea.hbm %s147_s2, 96 }
  0x1d   :  { %p88_p13 = scmp.ne.s32.totalorder %s147_s2, %s87_s27  ;;  %p91_p0 = scmp.lt.u32.totalorder %s87_s27, %s147_s2 }
  0x1f   :  { %p93_p1 = pnand %p91_p0, %p88_p13 }
  0x21   :  { %96 = shalt.err (!%p93_p1)
}
  0x22   :  { %44 = dma.vmem_to_hbm [thread:$0]  %s42_s22, 96, %s147_s2, [#allocation4]  }
  0x23   :  { %99 = dma.done.wait [#allocation4], 96  }
  0x24   :  { %100 = vsyncadd [#allocation4], 4294967200 }
  0x25   :  { %48 = vsyncpa [#allocation3], 1 }
  0x26   :  { %49 = vsyncpa [#allocation4], 1 }

</bundles_post_ra>
